<compile_context>
chip_gen: v7x
topology: tpu7x:2x2x1
jax: 0.10.0
libtpu: 0.0.40
codegen_flags: <defaults>
</compile_context>

<pallas_src>
import numpy as np
import jax
import jax.numpy as jnp
from jax.experimental import pallas as pl
from jax.experimental.pallas import tpu as pltpu


# ----------------------------------------------------------------------------
# Pallas kernel: per grid step, evaluate BT query rows on one HW tile.
#   out[b, :] = | P[seg_b,0,:] + dz_b*(P[seg_b,1,:] + dz_b*(P[seg_b,2,:]
#                 + dz_b*P[seg_b,3,:])) |          (PCA mean already folded in P0)
# ----------------------------------------------------------------------------
def _psf_z_kernel(seg_ref, dz_ref, p_ref, out_ref):
    # seg_ref : SMEM (B_pad,)             int32   spline segment per query
    # dz_ref  : SMEM (B_pad,)             float32 z - z_list[segment] per query
    # p_ref   : VMEM (n_seg, 4, hw_tile)  float32 precontracted poly-in-pixel table
    # out_ref : VMEM (BT, hw_tile)        float32
    bt = out_ref.shape[0]
    base = pl.program_id(0) * bt
    rows = []
    for r in range(bt):                     # static unroll (bt == 8)
        s = seg_ref[base + r]               # scalar int32 from SMEM
        dz = dz_ref[base + r]               # scalar f32 from SMEM
        p = p_ref[s]                        # (4, hw_tile): dynamic leading-dim slice
        rows.append(p[0:1, :] + dz * (p[1:2, :] + dz * (p[2:3, :] + dz * p[3:4, :])))
    # One sublane+lane-dense (BT, hw_tile) store instead of BT masked row stores.
    out_ref[...] = jnp.abs(jnp.concatenate(rows, axis=0))


def _psf_z_pallas(seg, dz, p_table, *, bt, hw_tile):
    n_seg, _, hw = p_table.shape
    b_pad = seg.shape[0]
    grid = (b_pad // bt, hw // hw_tile)
    return pl.pallas_call(
        _psf_z_kernel,
        out_shape=jax.ShapeDtypeStruct((b_pad, hw), jnp.float32),
        grid=grid,
        in_specs=[
            pl.BlockSpec(memory_space=pltpu.MemorySpace.SMEM),            # seg (whole)
            pl.BlockSpec(memory_space=pltpu.MemorySpace.SMEM),            # dz  (whole)
            pl.BlockSpec((n_seg, 4, hw_tile), lambda i, j: (0, 0, j)),    # P tile
        ],
        out_specs=pl.BlockSpec((bt, hw_tile), lambda i, j: (i, j)),
        compiler_params=pltpu.CompilerParams(
            dimension_semantics=("parallel", "parallel")),
    )(seg, dz, p_table)


def _pick_hw_tile(hw, cap=2048):
    """Largest lane-tile: full HW if small / not 128-divisible, else a
    multiple-of-128 divisor of HW bounded by `cap` (keeps blocks in VMEM)."""
    if hw <= cap or hw % 128 != 0:
        return hw
    for t in range(cap - cap % 128, 127, -128):
        if hw % t == 0:
            return t
    return hw


# ----------------------------------------------------------------------------
# Numpy glue: PCA fit + not-a-knot cubic spline coefficients (init-time only)
# ----------------------------------------------------------------------------
def _pca_fit(X, vr):
    """sklearn-style PCA keeping enough components to explain `vr` of variance."""
    mean = X.mean(axis=0)
    Xc = X - mean
    U, S, Vt = np.linalg.svd(Xc, full_matrices=False)
    explained = (S ** 2) / (X.shape[0] - 1)
    ratio = explained / explained.sum()
    k = int(np.searchsorted(np.cumsum(ratio), vr, side="right") + 1)
    k = min(k, Vt.shape[0])
    components = Vt[:k]                       # (K, HW)
    X_new = Xc @ components.T                 # (N, K)
    return X_new, components, mean


def _notaknot_cubic_coeffs(x, Y):
    """Piecewise-cubic coeffs (not-a-knot BC) for each column of Y over knots x.

    Returns coef of shape (n_seg, 4, K): value on segment i is
    sum_j coef[i, j, :] * (z - x[i])**j  — matches scipy interp1d(kind='cubic').
    """
    x = np.asarray(x, dtype=np.float64)
    Y = np.asarray(Y, dtype=np.float64)
    m, K = Y.shape
    n = m - 1
    h = np.diff(x)
    A = np.zeros((4 * n, 4 * n))
    B = np.zeros((4 * n, K))
    row = 0
    for i in range(n):
        A[row, 4 * i] = 1.0
        B[row] = Y[i]
        row += 1
        hi = h[i]
        A[row, 4 * i:4 * i + 4] = [1.0, hi, hi ** 2, hi ** 3]
        B[row] = Y[i + 1]
        row += 1
    for i in range(n - 1):
        hi = h[i]
        A[row, 4 * i:4 * i + 4] = [0.0, 1.0, 2.0 * hi, 3.0 * hi ** 2]
        A[row, 4 * (i + 1) + 1] = -1.0
        row += 1
        A[row, 4 * i:4 * i + 4] = [0.0, 0.0, 2.0, 6.0 * hi]
        A[row, 4 * (i + 1) + 2] = -2.0
        row += 1
    # not-a-knot: third-derivative continuity at the first and last interior knots
    A[row, 4 * 0 + 3] = 6.0
    A[row, 4 * 1 + 3] = -6.0
    row += 1
    A[row, 4 * (n - 2) + 3] = 6.0
    A[row, 4 * (n - 1) + 3] = -6.0
    row += 1
    coef = np.linalg.solve(A, B)              # (4n, K)
    return coef.reshape(n, 4, K)


# ----------------------------------------------------------------------------
# PPG_z equivalent
# ----------------------------------------------------------------------------
class PPGzPallas:
    def __init__(self, psf_stack, z_list, vr=0.99, batch_tile=8):
        psf_stack = np.asarray(psf_stack, dtype=np.float32)
        z_list = np.asarray(z_list, dtype=np.float32)
        self.z_list = z_list
        self.zmin, self.zmax = float(z_list.min()), float(z_list.max())
        self.num_z, self.psf_h, self.psf_w = psf_stack.shape
        self.hw = self.psf_h * self.psf_w
        self.bt = int(batch_tile)
        self.hw_tile = _pick_hw_tile(self.hw)

        # ---- PCA fit (f64) ----------------------------------------------------
        X = psf_stack.reshape(self.num_z, -1).astype(np.float64)
        self.X_new, components, mean = _pca_fit(X, vr)
        self.new_dimensionality = self.X_new.shape[1]
        self.pcs = components.reshape(-1, self.psf_h, self.psf_w)

        # ---- spline coeffs + pre-contraction with PCA components (f64) --------
        self.spline_coef = _notaknot_cubic_coeffs(z_list, self.X_new)   # (n_seg,4,K)
        P = np.einsum("sjk,kd->sjd", self.spline_coef, components)      # (n_seg,4,HW)
        P[:, 0, :] += mean                                              # fold the mean
        # Device-resident parameters. The P table is small here; for very large
        # PSFs / many z planes it would be kept in HBM and DMA'd per segment.
        self.p_table = jnp.asarray(P, dtype=jnp.float32)                # (n_seg,4,HW)
        self.z_list_dev = jnp.asarray(z_list, dtype=jnp.float32)

        # f64 copies for the pure-numpy reference
        self._components_np = components
        self._mean_np = mean

        # jitted device path (segment select + dz + Pallas kernel)
        self._run = jax.jit(self._device_forward)

    # ---- on-device part: jittable, batched ------------------------------------
    def _device_forward(self, z_pad, z_knots, p_table):
        n_seg = p_table.shape[0]
        seg = jnp.clip(jnp.searchsorted(z_knots, z_pad, side="right") - 1,
                       0, n_seg - 1).astype(jnp.int32)
        dz = (z_pad - z_knots[seg]).astype(jnp.float32)
        return _psf_z_pallas(seg, dz, p_table, bt=self.bt, hw_tile=self.hw_tile)

    # ---- public API ------------------------------------------------------------
    def forward(self, z):
        z = float(z)
        if z < self.zmin or z > self.zmax:
            raise Exception("Out of z range")
        z_pad = jnp.full((self.bt,), z, dtype=jnp.float32)
        out = self._run(z_pad, self.z_list_dev, self.p_table)
        return out[0].reshape(self.psf_h, self.psf_w)

    def forward_batch(self, zs):
        zs = np.asarray(zs, dtype=np.float32).reshape(-1)
        if (zs < self.zmin).any() or (zs > self.zmax).any():
            raise Exception("Out of z range")
        b = zs.shape[0]
        b_pad = ((b + self.bt - 1) // self.bt) * self.bt
        zp = np.concatenate([zs, np.full((b_pad - b,), zs[-1], np.float32)])
        out = self._run(jnp.asarray(zp), self.z_list_dev, self.p_table)
        return out[:b].reshape(b, self.psf_h, self.psf_w)

    def forward_ref(self, z):
        """Pure-numpy (f64) reference of the same forward pass."""
        z = float(z)
        seg = int(np.clip(np.searchsorted(self.z_list, z, side="right") - 1,
                          0, self.num_z - 2))
        dz = z - float(self.z_list[seg])
        co = self.spline_coef[seg]                                       # (4, K)
        c = co[0] + dz * (co[1] + dz * (co[2] + dz * co[3]))             # (K,)
        psf = c @ self._components_np + self._mean_np
        return np.abs(psf).reshape(self.psf_h, self.psf_w).astype(np.float32)


if __name__ == "__main__":
    # small deterministic setup: num_z=8 PSF planes of size 16x16
    key = jax.random.PRNGKey(0)
    num_z, h, w = 8, 16, 16
    raw = jax.random.uniform(key, (num_z, h, w), dtype=jnp.float32)
    psf_stack = np.asarray(raw)
    psf_stack = psf_stack / psf_stack.sum(axis=(1, 2), keepdims=True)
    z_list = np.linspace(-1.0, 1.0, num_z).astype(np.float32)

    model = PPGzPallas(psf_stack, z_list, vr=0.99)

    # single-query forward (original module API)
    z_query = 0.37
    psf_z = jax.block_until_ready(model.forward(z_query))
    ref = model.forward_ref(z_query)
    assert psf_z.shape == (h, w)
    assert np.allclose(np.asarray(psf_z), ref, rtol=1e-4, atol=1e-5), "mismatch vs reference"

    # batched forward: 8 z queries in a single pallas_call
    z_batch = np.linspace(-0.9, 0.95, 8).astype(np.float32)
    psf_b = jax.block_until_ready(model.forward_batch(z_batch))
    assert psf_b.shape == (8, h, w)
    for i, zq in enumerate(z_batch):
        ref_i = model.forward_ref(zq)
        assert np.allclose(np.asarray(psf_b[i]), ref_i, rtol=1e-4, atol=1e-5), \
            f"batched mismatch at query {i}"

    print("KERNEL_OK")
</pallas_src>

<mosaic_0001>
module attributes {stable_mosaic.version = 11 : i64} {
  func.func @_psf_z_kernel(%arg0: i32, %arg1: i32, %arg2: memref<8xi32, #tpu.memory_space<smem>>, %arg3: memref<8xf32, #tpu.memory_space<smem>>, %arg4: memref<7x4x256xf32, #tpu.memory_space<vmem>>, %arg5: memref<8x256xf32, #tpu.memory_space<vmem>>) attributes {dimension_semantics = [#tpu.dimension_semantics<parallel>, #tpu.dimension_semantics<parallel>], iteration_bounds = array<i64: 1, 1>, scalar_prefetch = 0 : i64, scratch_operands = 0 : i64, tpu.core_type = #tpu.core_type<tc>, window_params = [{transform_indices = @transform_0, window_bounds = array<i64: 8>}, {transform_indices = @transform_1, window_bounds = array<i64: 8>}, {transform_indices = @transform_2, window_bounds = array<i64: 7, 4, 256>}, {transform_indices = @transform_3, window_bounds = array<i64: 8, 256>}]} {
    %c8_i32 = arith.constant 8 : i32
    %0 = arith.muli %arg0, %c8_i32 : i32
    %c0_i32 = arith.constant 0 : i32
    %1 = arith.addi %0, %c0_i32 : i32
    %2 = arith.index_cast %1 : i32 to index
    %3 = memref.load %arg2[%2] : memref<8xi32, #tpu.memory_space<smem>>
    %c0_i32_0 = arith.constant 0 : i32
    %4 = arith.addi %0, %c0_i32_0 : i32
    %5 = arith.index_cast %4 : i32 to index
    %6 = memref.load %arg3[%5] : memref<8xf32, #tpu.memory_space<smem>>
    %7 = arith.index_cast %3 : i32 to index
    %c0 = arith.constant 0 : index
    %c0_1 = arith.constant 0 : index
    %8 = vector.load %arg4[%7, %c0, %c0_1] : memref<7x4x256xf32, #tpu.memory_space<vmem>>, vector<1x4x256xf32>
    %9 = vector.shape_cast %8 : vector<1x4x256xf32> to vector<4x256xf32>
    %10 = vector.extract_strided_slice %9 {offsets = [0, 0], sizes = [1, 256], strides = [1, 1]} : vector<4x256xf32> to vector<1x256xf32>
    %11 = vector.extract_strided_slice %9 {offsets = [1, 0], sizes = [1, 256], strides = [1, 1]} : vector<4x256xf32> to vector<1x256xf32>
    %12 = vector.extract_strided_slice %9 {offsets = [2, 0], sizes = [1, 256], strides = [1, 1]} : vector<4x256xf32> to vector<1x256xf32>
    %13 = vector.extract_strided_slice %9 {offsets = [3, 0], sizes = [1, 256], strides = [1, 1]} : vector<4x256xf32> to vector<1x256xf32>
    %14 = vector.broadcast %6 : f32 to vector<1x256xf32>
    %15 = arith.mulf %14, %13 : vector<1x256xf32>
    %16 = arith.addf %12, %15 : vector<1x256xf32>
    %17 = vector.broadcast %6 : f32 to vector<1x256xf32>
    %18 = arith.mulf %17, %16 : vector<1x256xf32>
    %19 = arith.addf %11, %18 : vector<1x256xf32>
    %20 = vector.broadcast %6 : f32 to vector<1x256xf32>
    %21 = arith.mulf %20, %19 : vector<1x256xf32>
    %22 = arith.addf %10, %21 : vector<1x256xf32>
    %c1_i32 = arith.constant 1 : i32
    %23 = arith.addi %0, %c1_i32 : i32
    %24 = arith.index_cast %23 : i32 to index
    %25 = memref.load %arg2[%24] : memref<8xi32, #tpu.memory_space<smem>>
    %c1_i32_2 = arith.constant 1 : i32
    %26 = arith.addi %0, %c1_i32_2 : i32
    %27 = arith.index_cast %26 : i32 to index
    %28 = memref.load %arg3[%27] : memref<8xf32, #tpu.memory_space<smem>>
    %29 = arith.index_cast %25 : i32 to index
    %c0_3 = arith.constant 0 : index
    %c0_4 = arith.constant 0 : index
    %30 = vector.load %arg4[%29, %c0_3, %c0_4] : memref<7x4x256xf32, #tpu.memory_space<vmem>>, vector<1x4x256xf32>
    %31 = vector.shape_cast %30 : vector<1x4x256xf32> to vector<4x256xf32>
    %32 = vector.extract_strided_slice %31 {offsets = [0, 0], sizes = [1, 256], strides = [1, 1]} : vector<4x256xf32> to vector<1x256xf32>
    %33 = vector.extract_strided_slice %31 {offsets = [1, 0], sizes = [1, 256], strides = [1, 1]} : vector<4x256xf32> to vector<1x256xf32>
    %34 = vector.extract_strided_slice %31 {offsets = [2, 0], sizes = [1, 256], strides = [1, 1]} : vector<4x256xf32> to vector<1x256xf32>
    %35 = vector.extract_strided_slice %31 {offsets = [3, 0], sizes = [1, 256], strides = [1, 1]} : vector<4x256xf32> to vector<1x256xf32>
    %36 = vector.broadcast %28 : f32 to vector<1x256xf32>
    %37 = arith.mulf %36, %35 : vector<1x256xf32>
    %38 = arith.addf %34, %37 : vector<1x256xf32>
    %39 = vector.broadcast %28 : f32 to vector<1x256xf32>
    %40 = arith.mulf %39, %38 : vector<1x256xf32>
    %41 = arith.addf %33, %40 : vector<1x256xf32>
    %42 = vector.broadcast %28 : f32 to vector<1x256xf32>
    %43 = arith.mulf %42, %41 : vector<1x256xf32>
    %44 = arith.addf %32, %43 : vector<1x256xf32>
    %c2_i32 = arith.constant 2 : i32
    %45 = arith.addi %0, %c2_i32 : i32
    %46 = arith.index_cast %45 : i32 to index
    %47 = memref.load %arg2[%46] : memref<8xi32, #tpu.memory_space<smem>>
    %c2_i32_5 = arith.constant 2 : i32
    %48 = arith.addi %0, %c2_i32_5 : i32
    %49 = arith.index_cast %48 : i32 to index
    %50 = memref.load %arg3[%49] : memref<8xf32, #tpu.memory_space<smem>>
    %51 = arith.index_cast %47 : i32 to index
    %c0_6 = arith.constant 0 : index
    %c0_7 = arith.constant 0 : index
    %52 = vector.load %arg4[%51, %c0_6, %c0_7] : memref<7x4x256xf32, #tpu.memory_space<vmem>>, vector<1x4x256xf32>
    %53 = vector.shape_cast %52 : vector<1x4x256xf32> to vector<4x256xf32>
    %54 = vector.extract_strided_slice %53 {offsets = [0, 0], sizes = [1, 256], strides = [1, 1]} : vector<4x256xf32> to vector<1x256xf32>
    %55 = vector.extract_strided_slice %53 {offsets = [1, 0], sizes = [1, 256], strides = [1, 1]} : vector<4x256xf32> to vector<1x256xf32>
    %56 = vector.extract_strided_slice %53 {offsets = [2, 0], sizes = [1, 256], strides = [1, 1]} : vector<4x256xf32> to vector<1x256xf32>
    %57 = vector.extract_strided_slice %53 {offsets = [3, 0], sizes = [1, 256], strides = [1, 1]} : vector<4x256xf32> to vector<1x256xf32>
    %58 = vector.broadcast %50 : f32 to vector<1x256xf32>
    %59 = arith.mulf %58, %57 : vector<1x256xf32>
    %60 = arith.addf %56, %59 : vector<1x256xf32>
    %61 = vector.broadcast %50 : f32 to vector<1x256xf32>
    %62 = arith.mulf %61, %60 : vector<1x256xf32>
    %63 = arith.addf %55, %62 : vector<1x256xf32>
    %64 = vector.broadcast %50 : f32 to vector<1x256xf32>
    %65 = arith.mulf %64, %63 : vector<1x256xf32>
    %66 = arith.addf %54, %65 : vector<1x256xf32>
    %c3_i32 = arith.constant 3 : i32
    %67 = arith.addi %0, %c3_i32 : i32
    %68 = arith.index_cast %67 : i32 to index
    %69 = memref.load %arg2[%68] : memref<8xi32, #tpu.memory_space<smem>>
    %c3_i32_8 = arith.constant 3 : i32
    %70 = arith.addi %0, %c3_i32_8 : i32
    %71 = arith.index_cast %70 : i32 to index
    %72 = memref.load %arg3[%71] : memref<8xf32, #tpu.memory_space<smem>>
    %73 = arith.index_cast %69 : i32 to index
    %c0_9 = arith.constant 0 : index
    %c0_10 = arith.constant 0 : index
    %74 = vector.load %arg4[%73, %c0_9, %c0_10] : memref<7x4x256xf32, #tpu.memory_space<vmem>>, vector<1x4x256xf32>
    %75 = vector.shape_cast %74 : vector<1x4x256xf32> to vector<4x256xf32>
    %76 = vector.extract_strided_slice %75 {offsets = [0, 0], sizes = [1, 256], strides = [1, 1]} : vector<4x256xf32> to vector<1x256xf32>
    %77 = vector.extract_strided_slice %75 {offsets = [1, 0], sizes = [1, 256], strides = [1, 1]} : vector<4x256xf32> to vector<1x256xf32>
    %78 = vector.extract_strided_slice %75 {offsets = [2, 0], sizes = [1, 256], strides = [1, 1]} : vector<4x256xf32> to vector<1x256xf32>
    %79 = vector.extract_strided_slice %75 {offsets = [3, 0], sizes = [1, 256], strides = [1, 1]} : vector<4x256xf32> to vector<1x256xf32>
    %80 = vector.broadcast %72 : f32 to vector<1x256xf32>
    %81 = arith.mulf %80, %79 : vector<1x256xf32>
    %82 = arith.addf %78, %81 : vector<1x256xf32>
    %83 = vector.broadcast %72 : f32 to vector<1x256xf32>
    %84 = arith.mulf %83, %82 : vector<1x256xf32>
    %85 = arith.addf %77, %84 : vector<1x256xf32>
    %86 = vector.broadcast %72 : f32 to vector<1x256xf32>
    %87 = arith.mulf %86, %85 : vector<1x256xf32>
    %88 = arith.addf %76, %87 : vector<1x256xf32>
    %c4_i32 = arith.constant 4 : i32
    %89 = arith.addi %0, %c4_i32 : i32
    %90 = arith.index_cast %89 : i32 to index
    %91 = memref.load %arg2[%90] : memref<8xi32, #tpu.memory_space<smem>>
    %c4_i32_11 = arith.constant 4 : i32
    %92 = arith.addi %0, %c4_i32_11 : i32
    %93 = arith.index_cast %92 : i32 to index
    %94 = memref.load %arg3[%93] : memref<8xf32, #tpu.memory_space<smem>>
    %95 = arith.index_cast %91 : i32 to index
    %c0_12 = arith.constant 0 : index
    %c0_13 = arith.constant 0 : index
    %96 = vector.load %arg4[%95, %c0_12, %c0_13] : memref<7x4x256xf32, #tpu.memory_space<vmem>>, vector<1x4x256xf32>
    %97 = vector.shape_cast %96 : vector<1x4x256xf32> to vector<4x256xf32>
    %98 = vector.extract_strided_slice %97 {offsets = [0, 0], sizes = [1, 256], strides = [1, 1]} : vector<4x256xf32> to vector<1x256xf32>
    %99 = vector.extract_strided_slice %97 {offsets = [1, 0], sizes = [1, 256], strides = [1, 1]} : vector<4x256xf32> to vector<1x256xf32>
    %100 = vector.extract_strided_slice %97 {offsets = [2, 0], sizes = [1, 256], strides = [1, 1]} : vector<4x256xf32> to vector<1x256xf32>
    %101 = vector.extract_strided_slice %97 {offsets = [3, 0], sizes = [1, 256], strides = [1, 1]} : vector<4x256xf32> to vector<1x256xf32>
    %102 = vector.broadcast %94 : f32 to vector<1x256xf32>
    %103 = arith.mulf %102, %101 : vector<1x256xf32>
    %104 = arith.addf %100, %103 : vector<1x256xf32>
    %105 = vector.broadcast %94 : f32 to vector<1x256xf32>
    %106 = arith.mulf %105, %104 : vector<1x256xf32>
    %107 = arith.addf %99, %106 : vector<1x256xf32>
    %108 = vector.broadcast %94 : f32 to vector<1x256xf32>
    %109 = arith.mulf %108, %107 : vector<1x256xf32>
    %110 = arith.addf %98, %109 : vector<1x256xf32>
    %c5_i32 = arith.constant 5 : i32
    %111 = arith.addi %0, %c5_i32 : i32
    %112 = arith.index_cast %111 : i32 to index
    %113 = memref.load %arg2[%112] : memref<8xi32, #tpu.memory_space<smem>>
    %c5_i32_14 = arith.constant 5 : i32
    %114 = arith.addi %0, %c5_i32_14 : i32
    %115 = arith.index_cast %114 : i32 to index
    %116 = memref.load %arg3[%115] : memref<8xf32, #tpu.memory_space<smem>>
    %117 = arith.index_cast %113 : i32 to index
    %c0_15 = arith.constant 0 : index
    %c0_16 = arith.constant 0 : index
    %118 = vector.load %arg4[%117, %c0_15, %c0_16] : memref<7x4x256xf32, #tpu.memory_space<vmem>>, vector<1x4x256xf32>
    %119 = vector.shape_cast %118 : vector<1x4x256xf32> to vector<4x256xf32>
    %120 = vector.extract_strided_slice %119 {offsets = [0, 0], sizes = [1, 256], strides = [1, 1]} : vector<4x256xf32> to vector<1x256xf32>
    %121 = vector.extract_strided_slice %119 {offsets = [1, 0], sizes = [1, 256], strides = [1, 1]} : vector<4x256xf32> to vector<1x256xf32>
    %122 = vector.extract_strided_slice %119 {offsets = [2, 0], sizes = [1, 256], strides = [1, 1]} : vector<4x256xf32> to vector<1x256xf32>
    %123 = vector.extract_strided_slice %119 {offsets = [3, 0], sizes = [1, 256], strides = [1, 1]} : vector<4x256xf32> to vector<1x256xf32>
    %124 = vector.broadcast %116 : f32 to vector<1x256xf32>
    %125 = arith.mulf %124, %123 : vector<1x256xf32>
    %126 = arith.addf %122, %125 : vector<1x256xf32>
    %127 = vector.broadcast %116 : f32 to vector<1x256xf32>
    %128 = arith.mulf %127, %126 : vector<1x256xf32>
    %129 = arith.addf %121, %128 : vector<1x256xf32>
    %130 = vector.broadcast %116 : f32 to vector<1x256xf32>
    %131 = arith.mulf %130, %129 : vector<1x256xf32>
    %132 = arith.addf %120, %131 : vector<1x256xf32>
    %c6_i32 = arith.constant 6 : i32
    %133 = arith.addi %0, %c6_i32 : i32
    %134 = arith.index_cast %133 : i32 to index
    %135 = memref.load %arg2[%134] : memref<8xi32, #tpu.memory_space<smem>>
    %c6_i32_17 = arith.constant 6 : i32
    %136 = arith.addi %0, %c6_i32_17 : i32
    %137 = arith.index_cast %136 : i32 to index
    %138 = memref.load %arg3[%137] : memref<8xf32, #tpu.memory_space<smem>>
    %139 = arith.index_cast %135 : i32 to index
    %c0_18 = arith.constant 0 : index
    %c0_19 = arith.constant 0 : index
    %140 = vector.load %arg4[%139, %c0_18, %c0_19] : memref<7x4x256xf32, #tpu.memory_space<vmem>>, vector<1x4x256xf32>
    %141 = vector.shape_cast %140 : vector<1x4x256xf32> to vector<4x256xf32>
    %142 = vector.extract_strided_slice %141 {offsets = [0, 0], sizes = [1, 256], strides = [1, 1]} : vector<4x256xf32> to vector<1x256xf32>
    %143 = vector.extract_strided_slice %141 {offsets = [1, 0], sizes = [1, 256], strides = [1, 1]} : vector<4x256xf32> to vector<1x256xf32>
    %144 = vector.extract_strided_slice %141 {offsets = [2, 0], sizes = [1, 256], strides = [1, 1]} : vector<4x256xf32> to vector<1x256xf32>
    %145 = vector.extract_strided_slice %141 {offsets = [3, 0], sizes = [1, 256], strides = [1, 1]} : vector<4x256xf32> to vector<1x256xf32>
    %146 = vector.broadcast %138 : f32 to vector<1x256xf32>
    %147 = arith.mulf %146, %145 : vector<1x256xf32>
    %148 = arith.addf %144, %147 : vector<1x256xf32>
    %149 = vector.broadcast %138 : f32 to vector<1x256xf32>
    %150 = arith.mulf %149, %148 : vector<1x256xf32>
    %151 = arith.addf %143, %150 : vector<1x256xf32>
    %152 = vector.broadcast %138 : f32 to vector<1x256xf32>
    %153 = arith.mulf %152, %151 : vector<1x256xf32>
    %154 = arith.addf %142, %153 : vector<1x256xf32>
    %c7_i32 = arith.constant 7 : i32
    %155 = arith.addi %0, %c7_i32 : i32
    %156 = arith.index_cast %155 : i32 to index
    %157 = memref.load %arg2[%156] : memref<8xi32, #tpu.memory_space<smem>>
    %c7_i32_20 = arith.constant 7 : i32
    %158 = arith.addi %0, %c7_i32_20 : i32
    %159 = arith.index_cast %158 : i32 to index
    %160 = memref.load %arg3[%159] : memref<8xf32, #tpu.memory_space<smem>>
    %161 = arith.index_cast %157 : i32 to index
    %c0_21 = arith.constant 0 : index
    %c0_22 = arith.constant 0 : index
    %162 = vector.load %arg4[%161, %c0_21, %c0_22] : memref<7x4x256xf32, #tpu.memory_space<vmem>>, vector<1x4x256xf32>
    %163 = vector.shape_cast %162 : vector<1x4x256xf32> to vector<4x256xf32>
    %164 = vector.extract_strided_slice %163 {offsets = [0, 0], sizes = [1, 256], strides = [1, 1]} : vector<4x256xf32> to vector<1x256xf32>
    %165 = vector.extract_strided_slice %163 {offsets = [1, 0], sizes = [1, 256], strides = [1, 1]} : vector<4x256xf32> to vector<1x256xf32>
    %166 = vector.extract_strided_slice %163 {offsets = [2, 0], sizes = [1, 256], strides = [1, 1]} : vector<4x256xf32> to vector<1x256xf32>
    %167 = vector.extract_strided_slice %163 {offsets = [3, 0], sizes = [1, 256], strides = [1, 1]} : vector<4x256xf32> to vector<1x256xf32>
    %168 = vector.broadcast %160 : f32 to vector<1x256xf32>
    %169 = arith.mulf %168, %167 : vector<1x256xf32>
    %170 = arith.addf %166, %169 : vector<1x256xf32>
    %171 = vector.broadcast %160 : f32 to vector<1x256xf32>
    %172 = arith.mulf %171, %170 : vector<1x256xf32>
    %173 = arith.addf %165, %172 : vector<1x256xf32>
    %174 = vector.broadcast %160 : f32 to vector<1x256xf32>
    %175 = arith.mulf %174, %173 : vector<1x256xf32>
    %176 = arith.addf %164, %175 : vector<1x256xf32>
    %177 = tpu.concatenate %22, %44, %66, %88, %110, %132, %154, %176 in 0 : vector<1x256xf32>, vector<1x256xf32>, vector<1x256xf32>, vector<1x256xf32>, vector<1x256xf32>, vector<1x256xf32>, vector<1x256xf32>, vector<1x256xf32> -> vector<8x256xf32>
    %178 = math.absf %177 : vector<8x256xf32>
    %c0_23 = arith.constant 0 : index
    %c0_24 = arith.constant 0 : index
    %179 = vector.load %arg5[%c0_23, %c0_24] : memref<8x256xf32, #tpu.memory_space<vmem>>, vector<8x256xf32>
    tpu.vector_store %arg5[%c0_23, %c0_24], %178 {strides = array<i32>} : memref<8x256xf32, #tpu.memory_space<vmem>>, vector<8x256xf32>,
    return
  }
  func.func @transform_0(%arg0: i32, %arg1: i32) -> i32 {
    %c0_i32 = arith.constant 0 : i32
    %c0_i32_0 = arith.constant 0 : i32
    return %c0_i32 : i32
  }
  func.func @transform_1(%arg0: i32, %arg1: i32) -> i32 {
    %c0_i32 = arith.constant 0 : i32
    %c0_i32_0 = arith.constant 0 : i32
    return %c0_i32 : i32
  }
  func.func @transform_2(%arg0: i32, %arg1: i32) -> (i32, i32, i32) {
    %c0_i32 = arith.constant 0 : i32
    %c0_i32_0 = arith.constant 0 : i32
    %c0_i32_1 = arith.constant 0 : i32
    return %c0_i32, %c0_i32_0, %arg1 : i32, i32, i32
  }
  func.func @transform_3(%arg0: i32, %arg1: i32) -> (i32, i32) {
    %c0_i32 = arith.constant 0 : i32
    return %arg0, %arg1 : i32, i32
  }
}

</mosaic_0001>

<bundles_post_ra>
// kernel: custom-call.1
= control target key start
LH: loop header
LB: loop body
LE: loop exit
PB: predicated region body
PF: predicated region fallthrough
CT: control target
= control target key end

     0   :  { %s6_s0 = inlined_call_operand.vmem [shape: u32[8], index: 0, kind: output, shape index: {}]  }

// kernel: ne.4
= control target key start
LH: loop header
LB: loop body
LE: loop exit
PB: predicated region body
PF: predicated region fallthrough
CT: control target
= control target key end

     0   :  { %v15_v2 = vmov 0   ;;  %s40_s0 = inlined_call_operand.vmem [shape: f32[8], index: 0, kind: input, shape index: {}, may-alias: {0,1}]   ;;  %s41_s1 = inlined_call_operand.vmem [shape: f32[8], index: 1, kind: input, shape index: {}, may-alias: {0,1}]   ;;  %s42_s2 = inlined_call_operand.vmem [shape: pred[8], index: 2, kind: output, shape index: {}]  }
   0x1   :  { %v3_v0 = vld [vmem:[%s40_s0] sm:$0x1] }
   0x2   :  { %v4_v1 = vld [vmem:[%s41_s1] sm:$0x1] }
   0x3   :  { %vm7_vm0 = vcmp.ne.f32.partialorder %v3_v0, %v4_v1 }
   0x4   :  { %v8_v3 = vsel %vm7_vm0, 1, %v15_v2 }
   0x5   :  { %v10_v4 = vpack.c.b16 %v15_v2, %v8_v3 }
   0x7   :  { %v11_v5 = vpack.c.b8 %v15_v2, %v10_v4 }
   0x9   :  { %13 = vst [vmem:[%s42_s2] sm:$0x1] %v11_v5 }

// kernel: sub.5
= control target key start
LH: loop header
LB: loop body
LE: loop exit
PB: predicated region body
PF: predicated region fallthrough
CT: control target
= control target key end

     0   :  { %s34_s0 = inlined_call_operand.vmem [shape: f32[8], index: 0, kind: input, shape index: {}]   ;;  %s35_s1 = inlined_call_operand.vmem [shape: f32[8], index: 1, kind: input, shape index: {}]   ;;  %s36_s2 = inlined_call_operand.vmem [shape: f32[8], index: 2, kind: output, shape index: {}]  }
   0x1   :  { %v3_v0 = vld [vmem:[%s34_s0] sm:$0x1] }
   0x2   :  { %v4_v1 = vld [vmem:[%s35_s1] sm:$0x1] }
   0x3   :  { %v7_v2 = vsub.f32 %v3_v0, %v4_v1 }
   0x5   :  { %9 = vst [vmem:[%s36_s2] sm:$0x1] %v7_v2 }

// kernel: _device_forward.1
= control target key start
LH: loop header
LB: loop body
LE: loop exit
PB: predicated region body
PF: predicated region fallthrough
CT: control target
= control target key end

     0   :  { %8 = vsyncpa [#allocation4], 0  ;;  %s695_s0 = inlined_call_operand.vmem [shape: s32[8], index: 0, kind: input, shape index: {}]   ;;  %s696_s1 = inlined_call_operand.vmem [shape: f32[8], index: 1, kind: input, shape index: {}]   ;;  %s697_s2 = inlined_call_operand.vmem [shape: f32[7,4,256], index: 2, kind: input, shape index: {}]   ;;  %s698_s3 = inlined_call_operand.hbm [shape: f32[8,256], index: 3, kind: output, shape index: {}]  }
   0x1   :  { %9 = vsyncpa [#allocation6], 0 }
   0x2   :  { %10 = vsyncpa [#allocation3], 0  ;;  %s17_s14 = sshll.u32 %s695_s0, 4  ;;  %s27_s17 = sshll.u32 %s696_s1, 4  ;;  %s18_s14 = int_to_ptr.vmem [resolvable:$true] %s17_s14  ;;  %s28_s17 = int_to_ptr.vmem [resolvable:$true] %s27_s17 }
   0x3   :  { %s458_s18 = scalar_lea.vmem %s18_s14, 16  ;;  %p463_p1 = scmp.lt.s32.totalorder %s18_s14, %s18_s14 }
   0x4   :  { %p459_p0 = scmp.ne.s32.totalorder %s18_s14, %s458_s18  ;;  %p464_p2 = scmp.lt.s32.totalorder %s458_s18, %s458_s18 }
   0x6   :  { %p465_p3 = por %p464_p2, %p463_p1 }
   0x8   :  { %p466_p4 = pnand %p465_p3, %p459_p0 }
   0xa   :  { %469 = shalt.err (!%p466_p4)
}
   0xb   :  { %s510_s19 = smov [#allocation2]   ;;  %s470_s20 = scalar_lea.vmem %s28_s17, 16 }
   0xc   :  { %20 = dma.vmem_to_smem %s18_s14, 16, %s510_s19, [#allocation4]  }
   0xd   :  { %p471_p5 = scmp.ne.s32.totalorder %s28_s17, %s470_s20  ;;  %p475_p6 = scmp.lt.s32.totalorder %s28_s17, %s28_s17 }
   0xe   :  { %p476_p7 = scmp.lt.s32.totalorder %s470_s20, %s470_s20 }
  0x10   :  { %p477_p8 = por %p476_p7, %p475_p6 }
  0x12   :  { %p478_p9 = pnand %p477_p8, %p471_p5 }
  0x14   :  { %481 = shalt.err (!%p478_p9)
}
  0x15   :  { %s511_s0 = smov [#allocation5]  }
  0x16   :  { %30 = dma.vmem_to_smem %s28_s17, 16, %s511_s0, [#allocation6]  }
  0x17   :  { %504 = dma.done.wait [#allocation4], 16  }
  0x18   :  { %505 = vsyncadd [#allocation4], 4294967280 }
  0x19   :  { %506 = dma.done.wait [#allocation6], 16  }
  0x1a   :  { %507 = vsyncadd [#allocation6], 4294967280 }
  0x1b   :  { %39 = sfence }
  0x1c   :  { %s41_s1 = sld [smem:[#allocation2]]  ;;  %s398_s22 = sld [smem:[#allocation2 + $0x1]]  ;;  %v249_v4 = vlaneseq  ;;  %vm336_vm0 = vcmask 1040384   ;;  %vm339_vm1 = vcmask 1041408   ;;  %vm342_vm2 = vcmask 1042432  }
  0x1d   :  { %s42_s21 = sld [smem:[#allocation5]]  ;;  %s399_s23 = sld [smem:[#allocation5 + $0x1]]  ;;  %vm345_vm3 = vcmask 1043456   ;;  %vm348_vm4 = vcmask 1044480   ;;  %vm351_vm5 = vcmask 1045504   ;;  %vm354_vm6 = vcmask 1046528  }
  0x1e   :  { %s405_s24 = sld [smem:[#allocation2 + $0x2]]  ;;  %s412_s26 = sld [smem:[#allocation2 + $0x3]]  ;;  %v250_v18 = vshrl.u32 %v249_v4, 7 }
  0x1f   :  { %s406_s25 = sld [smem:[#allocation5 + $0x2]]  ;;  %s413_s27 = sld [smem:[#allocation5 + $0x3]] }
  0x20   :  { %s539_s28 = sld [smem:[#allocation2 + $0x4]]  ;;  %s541_s30 = sld [smem:[#allocation2 + $0x5]]  ;;  %v615_v33 = vsub.s32 0, %v250_v18  ;;  %v619_v37 = vsub.s32 4, %v250_v18 }
  0x21   :  { %s420_s29 = sld [smem:[#allocation5 + $0x4]]  ;;  %s427_s4 = sld [smem:[#allocation5 + $0x5]] }
  0x22   :  { %s447_s5 = sshll.u32 %s41_s1, 3  ;;  %s545_s6 = sld [smem:[#allocation2 + $0x6]] }
  0x23   :  { %v543_v0 = vstv %s42_s21  ;;  %s45_s9 = scalar_lea.vmem %s697_s2, %s447_s5  ;;  %s448_s10 = sshll.u32 %s398_s22, 3  ;;  %v550_v1 = vstv %s399_s23 }
  0x24   :  { %v552_v2 = vld [vmem:[%s45_s9] sm:$0xff]  ;;  %s71_s13 = scalar_lea.vmem %s697_s2, %s448_s10  ;;  %s449_s14 = sshll.u32 %s405_s24, 3 }
  0x25   :  { %v557_v3 = vstv %s406_s25  ;;  %v48_v5 = vmul.f32 %v543_v0, %v552_v2  ;;  %v561_v6 = vld [vmem:[%s71_s13] sm:$0xff]  ;;  %s97_s17 = scalar_lea.vmem %s697_s2, %s449_s14  ;;  %s450_s18 = sshll.u32 %s412_s26, 3  ;;  %v566_v7 = vstv %s413_s27 }
  0x26   :  { %v74_v8 = vmul.f32 %v550_v1, %v561_v6  ;;  %v570_v9 = vld [vmem:[%s97_s17] sm:$0xff]  ;;  %s123_s0 = scalar_lea.vmem %s697_s2, %s450_s18  ;;  %s451_s1 = sshll.u32 %s539_s28, 3 }
  0x27   :  { %v576_v10 = vstv %s420_s29  ;;  %v395_v11 = vrot.slane %v48_v5, 9  ;;  %v100_v12 = vmul.f32 %v557_v3, %v570_v9  ;;  %v580_v13 = vld [vmem:[%s123_s0] sm:$0xff]  ;;  %s149_s23 = scalar_lea.vmem %s697_s2, %s451_s1  ;;  %s452_s24 = sshll.u32 %s541_s30, 3  ;;  %v586_v14 = vstv %s427_s4 }
  0x28   :  { %v402_v15 = vrot.slane %v74_v8, 9  ;;  %v126_v16 = vmul.f32 %v566_v7, %v580_v13  ;;  %v590_v17 = vld [vmem:[%s149_s23] sm:$0xff]  ;;  %s175_s27 = scalar_lea.vmem %s697_s2, %s452_s24  ;;  %s434_s28 = sld [smem:[#allocation5 + $0x6]] }
  0x29   :  { %v53_v19 = vadd.f32 %v395_v11, %v552_v2  ;;  %v409_v20 = vrot.slane %v100_v12, 9  ;;  %v152_v21 = vmul.f32 %v576_v10, %v590_v17  ;;  %v598_v22 = vld [vmem:[%s175_s27] sm:$0xff]  ;;  %s453_s29 = sshll.u32 %s545_s6, 3  ;;  %s601_s30 = sld [smem:[#allocation2 + $0x7]] }
  0x2a   :  { %v79_v23 = vadd.f32 %v402_v15, %v561_v6  ;;  %v416_v24 = vrot.slane %v126_v16, 9  ;;  %v178_v25 = vmul.f32 %v586_v14, %v598_v22  ;;  %s201_s7 = scalar_lea.vmem %s697_s2, %s453_s29  ;;  %s441_s8 = sld [smem:[#allocation5 + $0x7]] }
  0x2b   :  { %v54_v26 = vmul.f32 %v53_v19, %v543_v0  ;;  %v105_v27 = vadd.f32 %v409_v20, %v570_v9  ;;  %v423_v28 = vrot.slane %v152_v21, 9  ;;  %v613_v32 = vld [vmem:[%s201_s7] sm:$0xff] }
  0x2c   :  { %v80_v29 = vmul.f32 %v79_v23, %v550_v1  ;;  %v131_v30 = vadd.f32 %v416_v24, %v580_v13  ;;  %v430_v31 = vrot.slane %v178_v25, 9 }
  0x2d   :  { %v396_v34 = vrot.slane %v54_v26, 9  ;;  %v106_v35 = vmul.f32 %v105_v27, %v557_v3  ;;  %v157_v36 = vadd.f32 %v423_v28, %v590_v17 }
  0x2e   :  { %v403_v38 = vrot.slane %v80_v29, 9  ;;  %v132_v39 = vmul.f32 %v131_v30, %v566_v7  ;;  %v183_v40 = vadd.f32 %v430_v31, %v598_v22  ;;  %v203_v41 = vstv %s434_s28 }
  0x2f   :  { %v59_v42 = vadd.f32 %v396_v34, %v552_v2  ;;  %v410_v43 = vrot.slane %v106_v35, 9  ;;  %v158_v44 = vmul.f32 %v157_v36, %v576_v10  ;;  %v204_v45 = vmul.f32 %v203_v41, %v613_v32  ;;  %s454_s6 = sshll.u32 %s601_s30, 3 }
  0x30   :  { %v85_v46 = vadd.f32 %v403_v38, %v561_v6  ;;  %v417_v47 = vrot.slane %v132_v39, 9  ;;  %v184_v48 = vmul.f32 %v183_v40, %v586_v14  ;;  %s227_s11 = scalar_lea.vmem %s697_s2, %s454_s6  ;;  %v229_v49 = vstv %s441_s8  ;;  %s512_s2 = smov [#allocation7]  }
  0x31   :  { %v60_v50 = vmul.f32 %v59_v42, %v543_v0  ;;  %v111_v51 = vadd.f32 %v410_v43, %v570_v9  ;;  %v424_v52 = vrot.slane %v158_v44, 9  ;;  %v437_v53 = vrot.slane %v204_v45, 9  ;;  %v634_v54 = vld [vmem:[%s227_s11] sm:$0xff]  ;;  %s367_s12 = sshll.u32 %s512_s2, 4  ;;  %s368_s12 = int_to_ptr.vmem [resolvable:$true] %s367_s12 }
  0x32   :  { %v86_v55 = vmul.f32 %v85_v46, %v550_v1  ;;  %v137_v56 = vadd.f32 %v417_v47, %v580_v13  ;;  %v431_v57 = vrot.slane %v184_v48, 9  ;;  %v230_v58 = vmul.f32 %v229_v49, %v634_v54  ;;  %s482_s13 = scalar_lea.vmem %s368_s12, 256  ;;  %p487_p11 = scmp.lt.s32.totalorder %s368_s12, %s368_s12 }
  0x33   :  { %v397_v59 = vrot.slane %v60_v50, 9  ;;  %v112_v60 = vmul.f32 %v111_v51, %v557_v3  ;;  %v163_v61 = vadd.f32 %v424_v52, %v590_v17  ;;  %v209_v62 = vadd.f32 %v437_v53, %v613_v32  ;;  %p483_p10 = scmp.ne.s32.totalorder %s368_s12, %s482_s13  ;;  %p488_p12 = scmp.lt.s32.totalorder %s482_s13, %s482_s13 }
  0x34   :  { %v404_v63 = vrot.slane %v86_v55, 9  ;;  %v138_v0 = vmul.f32 %v137_v56, %v566_v7  ;;  %v189_v4 = vadd.f32 %v431_v57, %v598_v22  ;;  %v444_v5 = vrot.slane %v230_v58, 9 }
  0x35   :  { %v65_v1 = vadd.f32 %v397_v59, %v552_v2  ;;  %v411_v8 = vrot.slane %v112_v60, 9  ;;  %v164_v11 = vmul.f32 %v163_v61, %v576_v10  ;;  %v210_v12 = vmul.f32 %v209_v62, %v203_v41  ;;  %p489_p13 = por %p488_p12, %p487_p11 }
  0x36   :  { %v91_v15 = vadd.f32 %v404_v63, %v561_v6  ;;  %v418_v3 = vrot.slane %v138_v0, 9  ;;  %v190_v16 = vmul.f32 %v189_v4, %v586_v14  ;;  %v235_v18 = vadd.f32 %v444_v5, %v634_v54 }
  0x37   :  { %v117_v19 = vadd.f32 %v411_v8, %v570_v9  ;;  %v425_v7 = vrot.slane %v164_v11, 9  ;;  %v438_v20 = vrot.slane %v210_v12, 9  ;;  %v252_v21 = vrot.slane %v65_v1, %v615_v33  ;;  %p490_p0 = pnand %p489_p13, %p483_p10 }
  0x38   :  { %v143_v2 = vadd.f32 %v418_v3, %v580_v13  ;;  %v432_v23 = vrot.slane %v190_v16, 9  ;;  %v236_v24 = vmul.f32 %v235_v18, %v229_v49  ;;  %v263_v10 = vrot.slane %v91_v15, %v615_v33 }
  0x39   :  { %v169_v25 = vadd.f32 %v425_v7, %v590_v17  ;;  %v215_v6 = vadd.f32 %v438_v20, %v613_v32  ;;  %v274_v14 = vrot.slane %v117_v19, %v615_v33  ;;  %v256_v26 = vrot.slane %v65_v1, %v619_v37 }
  0x3a   :  { %v195_v9 = vadd.f32 %v432_v23, %v598_v22  ;;  %v445_v27 = vrot.slane %v236_v24, 9  ;;  %v285_v28 = vrot.slane %v143_v2, %v615_v33  ;;  %v337_v29 = vsel %vm336_vm0, %v252_v21, %v263_v10 }
  0x3b   :  { %v216_v13 = vmul.f32 %v215_v6, %v203_v41  ;;  %v296_v30 = vrot.slane %v169_v25, %v615_v33  ;;  %v340_v31 = vsel %vm339_vm1, %v337_v29, %v274_v14  ;;  %v267_v17 = vrot.slane %v91_v15, %v619_v37 }
  0x3c   :  { %v241_v34 = vadd.f32 %v445_v27, %v634_v54  ;;  %v307_v35 = vrot.slane %v195_v9, %v615_v33  ;;  %v343_v36 = vsel %vm342_vm2, %v340_v31, %v285_v28  ;;  %v278_v22 = vrot.slane %v117_v19, %v619_v37 }
  0x3d   :  { %v439_v38 = vrot.slane %v216_v13, 9  ;;  %v346_v39 = vsel %vm345_vm3, %v343_v36, %v296_v30  ;;  %v289_v40 = vrot.slane %v143_v2, %v619_v37  ;;  %v300_v41 = vrot.slane %v169_v25, %v619_v37 }
  0x3e   :  { %v242_v42 = vmul.f32 %v241_v34, %v229_v49  ;;  %v311_v43 = vrot.slane %v195_v9, %v619_v37  ;;  %v338_v44 = vsel %vm336_vm0, %v256_v26, %v267_v17  ;;  %v349_v48 = vsel %vm348_vm4, %v346_v39, %v307_v35 }
  0x3f   :  { %v221_v45 = vadd.f32 %v439_v38, %v613_v32  ;;  %v341_v46 = vsel %vm339_vm1, %v338_v44, %v278_v22 }
  0x40   :  { %v446_v47 = vrot.slane %v242_v42, 9  ;;  %v344_v50 = vsel %vm342_vm2, %v341_v46, %v289_v40 }
  0x41   :  { %v318_v51 = vrot.slane %v221_v45, %v615_v33  ;;  %v322_v52 = vrot.slane %v221_v45, %v619_v37  ;;  %v347_v49 = vsel %vm345_vm3, %v344_v50, %v300_v41 }
  0x42   :  { %v247_v53 = vadd.f32 %v446_v47, %v634_v54  ;;  %v350_v55 = vsel %vm348_vm4, %v347_v49, %v311_v43 }
  0x43   :  { %v352_v56 = vsel %vm351_vm5, %v349_v48, %v318_v51  ;;  %v353_v32 = vsel %vm351_vm5, %v350_v55, %v322_v52 }
  0x44   :  { %v329_v57 = vrot.slane %v247_v53, %v615_v33  ;;  %v333_v58 = vrot.slane %v247_v53, %v619_v37 }
  0x46   :  { %v355_v59 = vsel %vm354_vm6, %v352_v56, %v329_v57  ;;  %v356_v60 = vsel %vm354_vm6, %v353_v32, %v333_v58 }
  0x47   :  { %v357_v61 = vand.u32 2147483647, %v355_v59  ;;  %v358_v62 = vand.u32 2147483647, %v356_v60 }
  0x49   :  { %359 = vst [vmem:[#allocation7] sm:$0xff] %v357_v61  ;;  %360 = vst [vmem:[#allocation7 + $0x8] sm:$0xff] %v358_v62 }
  0x4a   :  { %493 = shalt.err (!%p490_p0)
}
  0x4b   :  { %s494_s16 = scalar_lea.hbm %s698_s3, 256 }
  0x4c   :  { %p495_p1 = scmp.ne.s32.totalorder %s698_s3, %s494_s16  ;;  %p498_p2 = scmp.lt.u32.totalorder %s494_s16, %s698_s3 }
  0x4e   :  { %p500_p3 = pnand %p498_p2, %p495_p1 }
  0x50   :  { %503 = shalt.err (!%p500_p3)
}
  0x51   :  { %370 = dma.vmem_to_hbm [thread:$0]  %s368_s12, 256, %s698_s3, [#allocation3]  }
  0x52   :  { %508 = dma.done.wait [#allocation3], 256  }
  0x53   :  { %509 = vsyncadd [#allocation3], 4294967040 }
  0x54   :  { %374 = vsyncpa [#allocation3], 1 }
  0x55   :  { %375 = vsyncpa [#allocation4], 1 }
  0x56   :  { %376 = vsyncpa [#allocation6], 1 }

</bundles_post_ra>
